<compile_context>
chip_gen: v7x
topology: tpu7x:2x2x1
jax: 0.10.0
libtpu: 0.0.40
codegen_flags: <defaults>
</compile_context>

<pallas_src>
import jax
import jax.numpy as jnp
from jax.experimental import pallas as pl
from jax.experimental.pallas import tpu as pltpu

# ---------------- problem sizes (small, consistent with the module) ----------------
BATCH = 2
SEQ_LEN = 8
NUM_EDGES = 128          # args.num_edges
EDGE_DIM = 32            # args.edge_dim  (== args.direction_dim, required by the
DIRECTION_DIM = 32       #                 broadcasting in the reference forward)
DIRECTION = 4            # args.direction
PRE_LEN = 3              # args.pre_len


# --------------------------------- Pallas kernel -----------------------------------
def spatialkg_forward_kernel(last_obs_ref, gdir_ref, lam_ref,
                             link_tab_ref, demb_tab_ref, dhyp_tab_ref,
                             tails_ref, out_ref):
    """Fused gather + TransH projection + similarity scores.

    Scalar-prefetch (SMEM):
      last_obs_ref : (B,)  int32, last observed edge id (1..E)
      gdir_ref     : (B,)  int32, goal direction id (1..DIR)
      lam_ref      : (P,)  float32, lambda_distance weights
    VMEM:
      link_tab_ref : (E+1, D)  link embedding table (padding row 0)
      demb_tab_ref : (DIR+1, D) direction embedding table
      dhyp_tab_ref : (DIR+1, D) direction hyperplane table
      tails_ref    : (D, E)    candidate tail embeddings, pre-transposed (lane-dense RHS)
      out_ref      : (B, P*E)  similarity scores (lane-dense output)
    """
    tails = tails_ref[...]                                  # (D, E)

    heads, hypers, cs = [], [], []
    for b in range(BATCH):                                  # static unroll, B tiny
        li = last_obs_ref[b]
        gi = gdir_ref[b]
        link = link_tab_ref[pl.ds(li, 1), :]                # (1, D) gathered row
        demb = demb_tab_ref[pl.ds(gi, 1), :]                # (1, D)
        dhyp = dhyp_tab_ref[pl.ds(gi, 1), :]                # (1, D)

        # TransH projection of the head (last observed link) embedding.
        lh = jnp.sum(link * dhyp, axis=1, keepdims=True)    # (1, 1)
        head = link - dhyp * lh + demb                      # (1, D)
        c = jnp.sum(head * dhyp, axis=1, keepdims=True)     # (1, 1)  <head, hyper>

        heads.append(head)
        hypers.append(dhyp)
        cs.append(c)

    # One MXU matmul:  [head_0..head_{B-1}, hyper_0..hyper_{B-1}] @ tails  -> (2B, E)
    lhs = jnp.concatenate(heads + hypers, axis=0)           # (2B, D)
    prod = jnp.dot(lhs, tails, preferred_element_type=jnp.float32)  # (2B, E)
    a = prod[:BATCH, :]                                     # (B, E)  <head_b, tail_e>
    t = prod[BATCH:, :]                                     # (B, E)  <hyper_b, tail_e>
    c = jnp.concatenate(cs, axis=0)                         # (B, 1)
    s = a - c * t                                           # (B, E)  projected-tail scores

    # Per prediction step: scale by lambda and store into a lane-dense 384-wide output.
    for p in range(PRE_LEN):                                # static unroll, P = 3
        out_ref[:, p * NUM_EDGES:(p + 1) * NUM_EDGES] = lam_ref[p] * s


def spatialkg_scores(last_obs, goal_directions, lam,
                     link_table, dir_emb_table, dir_hyper_table, tails_t):
    B = last_obs.shape[0]
    E = tails_t.shape[1]
    P = lam.shape[0]
    return pl.pallas_call(
        spatialkg_forward_kernel,
        out_shape=jax.ShapeDtypeStruct((B, P * E), jnp.float32),
        grid_spec=pltpu.PrefetchScalarGridSpec(
            num_scalar_prefetch=3,
            grid=(1,),
            in_specs=[
                pl.BlockSpec(link_table.shape, lambda i, lo, gd, lm: (0, 0)),
                pl.BlockSpec(dir_emb_table.shape, lambda i, lo, gd, lm: (0, 0)),
                pl.BlockSpec(dir_hyper_table.shape, lambda i, lo, gd, lm: (0, 0)),
                pl.BlockSpec(tails_t.shape, lambda i, lo, gd, lm: (0, 0)),
            ],
            out_specs=pl.BlockSpec((B, P * E), lambda i, lo, gd, lm: (0, 0)),
        ),
        compiler_params=pltpu.CompilerParams(
            dimension_semantics=("arbitrary",)),
        # NOTE: at these sizes one block is the whole problem; if NUM_EDGES scales up,
        # add a "parallel" grid axis tiled over E (multiples of 256) for megacore.
    )(last_obs, goal_directions, lam,
      link_table, dir_emb_table, dir_hyper_table, tails_t)


# ------------------------------ parameter construction ------------------------------
def init_params(key):
    k1, k2, k3, k4 = jax.random.split(key, 4)
    # nn.Embedding default init ~ N(0, 1); padding_idx=0 row is zeroed.
    link_emb = jax.random.normal(k1, (NUM_EDGES + 1, EDGE_DIM), jnp.float32)
    link_emb = link_emb.at[0].set(0.0)
    direction_emb = jax.random.normal(k2, (DIRECTION + 1, DIRECTION_DIM), jnp.float32)
    direction_emb = direction_emb.at[0].set(0.0)
    direction_hyper = jax.random.normal(k3, (DIRECTION + 1, DIRECTION_DIM), jnp.float32)
    direction_hyper = direction_hyper.at[0].set(0.0)
    # lambda_distance: fixed weights [(i+1)/pre_len]  (passed to the kernel via SMEM).
    lambda_distance = jnp.arange(1, PRE_LEN + 1, dtype=jnp.float32) / PRE_LEN
    # loc_dlabels_matrix: per-pair direction labels in [0, DIRECTION)
    loc_dlabels_matrix = jax.random.randint(
        k4, (NUM_EDGES, NUM_EDGES), 0, DIRECTION, dtype=jnp.int32)
    # Pre-transposed candidate-tail table (lane-dense MXU RHS), derived once.
    link_emb_tails_t = jnp.asarray(link_emb[1:, :].T)       # (D, E) = (32, 128)
    return dict(
        link_emb=link_emb,
        link_emb_tails_t=link_emb_tails_t,
        direction_emb=direction_emb,
        direction_hyper=direction_hyper,
        lambda_distance=lambda_distance,
        loc_dlabels_matrix=loc_dlabels_matrix,
    )


# --------------------------------- forward wrapper ----------------------------------
def rnn_forward(params, inputs, directions, mask, goal, rand_key):
    # Inference path (type is None): the 'train' margin-loss block is skipped.
    del directions, mask  # not used on this path
    last_obs = inputs[:, -1].astype(jnp.int32)                                  # (B,) 1..E
    goal_directions = (params["loc_dlabels_matrix"][last_obs - 1, goal] + 1
                       ).astype(jnp.int32)                                      # (B,) 1..DIR

    # torch.cat over pre_len along dim=1  ==  the (B, P*E) layout the kernel stores directly.
    pred_hard = spatialkg_scores(
        last_obs, goal_directions, params["lambda_distance"],
        params["link_emb"], params["direction_emb"], params["direction_hyper"],
        params["link_emb_tails_t"])                                             # (B, P*E)

    B = inputs.shape[0]
    # TODO(synk): torch.rand uses torch's RNG stream; jax.random.uniform is the
    # semantic equivalent (values differ).
    pred_d_rand = jax.random.uniform(rand_key, (B, DIRECTION * PRE_LEN), jnp.float32)

    loss = jnp.float32(0.0)  # type != 'train'
    direction_correct = jnp.sum((goal_directions == goal_directions).astype(jnp.int32))
    return pred_hard, pred_d_rand, loss, direction_correct


# -------------------------------------- main ----------------------------------------
if __name__ == "__main__":
    root = jax.random.PRNGKey(0)
    kp, ki, kg, kd, kr = jax.random.split(root, 5)

    params = init_params(kp)

    inputs = jax.random.randint(ki, (BATCH, SEQ_LEN), 1, NUM_EDGES + 1, dtype=jnp.int32)
    directions = jax.random.randint(kd, (BATCH, SEQ_LEN), 1, DIRECTION + 1, dtype=jnp.int32)
    goal = jax.random.randint(kg, (BATCH,), 0, NUM_EDGES, dtype=jnp.int32)
    mask = [SEQ_LEN] * BATCH

    pred_hard, pred_d_rand, loss, direction_correct = rnn_forward(
        params, inputs, directions, mask, goal, kr)
    jax.block_until_ready((pred_hard, pred_d_rand, loss, direction_correct))

    assert pred_hard.shape == (BATCH, PRE_LEN * NUM_EDGES)
    assert pred_d_rand.shape == (BATCH, DIRECTION * PRE_LEN)
    assert int(direction_correct) == BATCH
    assert bool(jnp.all(jnp.isfinite(pred_hard)))
    print("KERNEL_OK")
</pallas_src>

<mosaic_0001>
module attributes {stable_mosaic.version = 11 : i64} {
  func.func @spatialkg_forward_kernel(%arg0: i32, %arg1: memref<2xi32, #tpu.memory_space<smem>>, %arg2: memref<2xi32, #tpu.memory_space<smem>>, %arg3: memref<3xf32, #tpu.memory_space<smem>>, %arg4: memref<129x32xf32, #tpu.memory_space<vmem>>, %arg5: memref<5x32xf32, #tpu.memory_space<vmem>>, %arg6: memref<5x32xf32, #tpu.memory_space<vmem>>, %arg7: memref<32x128xf32, #tpu.memory_space<vmem>>, %arg8: memref<2x384xf32, #tpu.memory_space<vmem>>) attributes {dimension_semantics = [#tpu.dimension_semantics<arbitrary>], iteration_bounds = array<i64: 1>, scalar_prefetch = 3 : i64, scratch_operands = 0 : i64, tpu.core_type = #tpu.core_type<tc>, window_params = [{pipeline_mode = #tpu.pipeline_mode<synchronous>, transform_indices = @transform_0, window_bounds = array<i64: 129, 32>}, {pipeline_mode = #tpu.pipeline_mode<synchronous>, transform_indices = @transform_1, window_bounds = array<i64: 5, 32>}, {pipeline_mode = #tpu.pipeline_mode<synchronous>, transform_indices = @transform_2, window_bounds = array<i64: 5, 32>}, {pipeline_mode = #tpu.pipeline_mode<synchronous>, transform_indices = @transform_3, window_bounds = array<i64: 32, 128>}, {pipeline_mode = #tpu.pipeline_mode<synchronous>, transform_indices = @transform_4, window_bounds = array<i64: 2, 384>}]} {
    %c0 = arith.constant 0 : index
    %c0_0 = arith.constant 0 : index
    %0 = vector.load %arg7[%c0, %c0_0] : memref<32x128xf32, #tpu.memory_space<vmem>>, vector<32x128xf32>
    %c0_1 = arith.constant 0 : index
    %1 = memref.load %arg1[%c0_1] : memref<2xi32, #tpu.memory_space<smem>>
    %c0_2 = arith.constant 0 : index
    %2 = memref.load %arg2[%c0_2] : memref<2xi32, #tpu.memory_space<smem>>
    %3 = arith.index_cast %1 : i32 to index
    %c0_3 = arith.constant 0 : index
    %4 = vector.load %arg4[%3, %c0_3] : memref<129x32xf32, #tpu.memory_space<vmem>>, vector<1x32xf32>
    %5 = arith.index_cast %2 : i32 to index
    %c0_4 = arith.constant 0 : index
    %6 = vector.load %arg5[%5, %c0_4] : memref<5x32xf32, #tpu.memory_space<vmem>>, vector<1x32xf32>
    %7 = arith.index_cast %2 : i32 to index
    %c0_5 = arith.constant 0 : index
    %8 = vector.load %arg6[%7, %c0_5] : memref<5x32xf32, #tpu.memory_space<vmem>>, vector<1x32xf32>
    %9 = arith.mulf %4, %8 : vector<1x32xf32>
    %cst = arith.constant dense<0.000000e+00> : vector<1xf32>
    %10 = vector.multi_reduction <add>, %9, %cst [1] : vector<1x32xf32> to vector<1xf32>
    %11 = vector.shape_cast %10 : vector<1xf32> to vector<1x1xf32>
    %12 = vector.broadcast %11 : vector<1x1xf32> to vector<1x32xf32>
    %13 = arith.mulf %8, %12 : vector<1x32xf32>
    %14 = arith.subf %4, %13 : vector<1x32xf32>
    %15 = arith.addf %14, %6 : vector<1x32xf32>
    %16 = arith.mulf %15, %8 : vector<1x32xf32>
    %cst_6 = arith.constant dense<0.000000e+00> : vector<1xf32>
    %17 = vector.multi_reduction <add>, %16, %cst_6 [1] : vector<1x32xf32> to vector<1xf32>
    %18 = vector.shape_cast %17 : vector<1xf32> to vector<1x1xf32>
    %c1 = arith.constant 1 : index
    %19 = memref.load %arg1[%c1] : memref<2xi32, #tpu.memory_space<smem>>
    %c1_7 = arith.constant 1 : index
    %20 = memref.load %arg2[%c1_7] : memref<2xi32, #tpu.memory_space<smem>>
    %21 = arith.index_cast %19 : i32 to index
    %c0_8 = arith.constant 0 : index
    %22 = vector.load %arg4[%21, %c0_8] : memref<129x32xf32, #tpu.memory_space<vmem>>, vector<1x32xf32>
    %23 = arith.index_cast %20 : i32 to index
    %c0_9 = arith.constant 0 : index
    %24 = vector.load %arg5[%23, %c0_9] : memref<5x32xf32, #tpu.memory_space<vmem>>, vector<1x32xf32>
    %25 = arith.index_cast %20 : i32 to index
    %c0_10 = arith.constant 0 : index
    %26 = vector.load %arg6[%25, %c0_10] : memref<5x32xf32, #tpu.memory_space<vmem>>, vector<1x32xf32>
    %27 = arith.mulf %22, %26 : vector<1x32xf32>
    %cst_11 = arith.constant dense<0.000000e+00> : vector<1xf32>
    %28 = vector.multi_reduction <add>, %27, %cst_11 [1] : vector<1x32xf32> to vector<1xf32>
    %29 = vector.shape_cast %28 : vector<1xf32> to vector<1x1xf32>
    %30 = vector.broadcast %29 : vector<1x1xf32> to vector<1x32xf32>
    %31 = arith.mulf %26, %30 : vector<1x32xf32>
    %32 = arith.subf %22, %31 : vector<1x32xf32>
    %33 = arith.addf %32, %24 : vector<1x32xf32>
    %34 = arith.mulf %33, %26 : vector<1x32xf32>
    %cst_12 = arith.constant dense<0.000000e+00> : vector<1xf32>
    %35 = vector.multi_reduction <add>, %34, %cst_12 [1] : vector<1x32xf32> to vector<1xf32>
    %36 = vector.shape_cast %35 : vector<1xf32> to vector<1x1xf32>
    %37 = tpu.concatenate %15, %33, %8, %26 in 0 : vector<1x32xf32>, vector<1x32xf32>, vector<1x32xf32>, vector<1x32xf32> -> vector<4x32xf32>
    %cst_13 = arith.constant dense<0.000000e+00> : vector<4x128xf32>
    %38 = tpu.matmul %37, %0, %cst_13 {dimension_numbers = #tpu.dot_dimension_numbers<[1], [0], [0], [1], [0, 0, 1, 1], [], []>} : vector<4x32xf32>, vector<32x128xf32>, vector<4x128xf32> -> vector<4x128xf32>
    %39 = vector.extract_strided_slice %38 {offsets = [0, 0], sizes = [2, 128], strides = [1, 1]} : vector<4x128xf32> to vector<2x128xf32>
    %40 = vector.extract_strided_slice %38 {offsets = [2, 0], sizes = [2, 128], strides = [1, 1]} : vector<4x128xf32> to vector<2x128xf32>
    %41 = tpu.concatenate %18, %36 in 0 : vector<1x1xf32>, vector<1x1xf32> -> vector<2x1xf32>
    %42 = vector.broadcast %41 : vector<2x1xf32> to vector<2x128xf32>
    %43 = arith.mulf %42, %40 : vector<2x128xf32>
    %44 = arith.subf %39, %43 : vector<2x128xf32>
    %c0_14 = arith.constant 0 : index
    %45 = memref.load %arg3[%c0_14] : memref<3xf32, #tpu.memory_space<smem>>
    %46 = vector.broadcast %45 : f32 to vector<2x128xf32>
    %47 = arith.mulf %46, %44 : vector<2x128xf32>
    %c0_15 = arith.constant 0 : index
    %c0_16 = arith.constant 0 : index
    %48 = vector.load %arg8[%c0_15, %c0_16] : memref<2x384xf32, #tpu.memory_space<vmem>>, vector<2x128xf32>
    tpu.vector_store %arg8[%c0_15, %c0_16], %47 {strides = array<i32>} : memref<2x384xf32, #tpu.memory_space<vmem>>, vector<2x128xf32>,
    %c1_17 = arith.constant 1 : index
    %49 = memref.load %arg3[%c1_17] : memref<3xf32, #tpu.memory_space<smem>>
    %50 = vector.broadcast %49 : f32 to vector<2x128xf32>
    %51 = arith.mulf %50, %44 : vector<2x128xf32>
    %c0_18 = arith.constant 0 : index
    %c128 = arith.constant 128 : index
    %52 = vector.load %arg8[%c0_18, %c128] : memref<2x384xf32, #tpu.memory_space<vmem>>, vector<2x128xf32>
    tpu.vector_store %arg8[%c0_18, %c128], %51 {strides = array<i32>} : memref<2x384xf32, #tpu.memory_space<vmem>>, vector<2x128xf32>,
    %c2 = arith.constant 2 : index
    %53 = memref.load %arg3[%c2] : memref<3xf32, #tpu.memory_space<smem>>
    %54 = vector.broadcast %53 : f32 to vector<2x128xf32>
    %55 = arith.mulf %54, %44 : vector<2x128xf32>
    %c0_19 = arith.constant 0 : index
    %c256 = arith.constant 256 : index
    %56 = vector.load %arg8[%c0_19, %c256] : memref<2x384xf32, #tpu.memory_space<vmem>>, vector<2x128xf32>
    tpu.vector_store %arg8[%c0_19, %c256], %55 {strides = array<i32>} : memref<2x384xf32, #tpu.memory_space<vmem>>, vector<2x128xf32>,
    return
  }
  func.func @transform_0(%arg0: i32, %arg1: memref<2xi32, #tpu.memory_space<smem>>, %arg2: memref<2xi32, #tpu.memory_space<smem>>, %arg3: memref<3xf32, #tpu.memory_space<smem>>) -> (i32, i32) {
    %c0_i32 = arith.constant 0 : i32
    %c0_i32_0 = arith.constant 0 : i32
    %c0_i32_1 = arith.constant 0 : i32
    return %c0_i32, %c0_i32_0 : i32, i32
  }
  func.func @transform_1(%arg0: i32, %arg1: memref<2xi32, #tpu.memory_space<smem>>, %arg2: memref<2xi32, #tpu.memory_space<smem>>, %arg3: memref<3xf32, #tpu.memory_space<smem>>) -> (i32, i32) {
    %c0_i32 = arith.constant 0 : i32
    %c0_i32_0 = arith.constant 0 : i32
    %c0_i32_1 = arith.constant 0 : i32
    return %c0_i32, %c0_i32_0 : i32, i32
  }
  func.func @transform_2(%arg0: i32, %arg1: memref<2xi32, #tpu.memory_space<smem>>, %arg2: memref<2xi32, #tpu.memory_space<smem>>, %arg3: memref<3xf32, #tpu.memory_space<smem>>) -> (i32, i32) {
    %c0_i32 = arith.constant 0 : i32
    %c0_i32_0 = arith.constant 0 : i32
    %c0_i32_1 = arith.constant 0 : i32
    return %c0_i32, %c0_i32_0 : i32, i32
  }
  func.func @transform_3(%arg0: i32, %arg1: memref<2xi32, #tpu.memory_space<smem>>, %arg2: memref<2xi32, #tpu.memory_space<smem>>, %arg3: memref<3xf32, #tpu.memory_space<smem>>) -> (i32, i32) {
    %c0_i32 = arith.constant 0 : i32
    %c0_i32_0 = arith.constant 0 : i32
    %c0_i32_1 = arith.constant 0 : i32
    return %c0_i32, %c0_i32_0 : i32, i32
  }
  func.func @transform_4(%arg0: i32, %arg1: memref<2xi32, #tpu.memory_space<smem>>, %arg2: memref<2xi32, #tpu.memory_space<smem>>, %arg3: memref<3xf32, #tpu.memory_space<smem>>) -> (i32, i32) {
    %c0_i32 = arith.constant 0 : i32
    %c0_i32_0 = arith.constant 0 : i32
    %c0_i32_1 = arith.constant 0 : i32
    return %c0_i32, %c0_i32_0 : i32, i32
  }
}

</mosaic_0001>

<bundles_post_ra>
// kernel: tpu_custom_call.1
= control target key start
LH: loop header
LB: loop body
LE: loop exit
PB: predicated region body
PF: predicated region fallthrough
CT: control target
= control target key end

     0   :  { %s424_s0 = inlined_call_operand.vmem [shape: s32[2], index: 0, kind: input, shape index: {}]   ;;  %s425_s3 = inlined_call_operand.vmem [shape: f32[129,32], index: 3, kind: input, shape index: {}]   ;;  %s426_s4 = inlined_call_operand.vmem [shape: f32[5,32], index: 4, kind: input, shape index: {}]   ;;  %s427_s5 = inlined_call_operand.vmem [shape: f32[5,32], index: 5, kind: input, shape index: {}]   ;;  %s428_s6 = inlined_call_operand.vmem [shape: f32[32,128], index: 6, kind: input, shape index: {}]   ;;  %s429_s7 = inlined_call_operand.hbm [shape: f32[2,384], index: 7, kind: output, shape index: {}]   ;;  %s430_s1 = inlined_call_operand.vmem [shape: s32[2], index: 1, kind: input, shape index: {}]   ;;  %s431_s2 = inlined_call_operand.vmem [shape: f32[3], index: 2, kind: input, shape index: {}]  }
   0x1   :  { %s12_s26 = sshll.u32 %s424_s0, 4  ;;  %s16_s29 = sshll.u32 %s430_s1, 4  ;;  %s13_s26 = int_to_ptr.vmem [resolvable:$true] %s12_s26  ;;  %s17_s29 = int_to_ptr.vmem [resolvable:$true] %s16_s29 }
   0x2   :  { %s249_s30 = scalar_lea.vmem %s13_s26, 16  ;;  %p254_p1 = scmp.lt.s32.totalorder %s13_s26, %s13_s26 }
   0x3   :  { %p250_p0 = scmp.ne.s32.totalorder %s13_s26, %s249_s30  ;;  %p255_p2 = scmp.lt.s32.totalorder %s249_s30, %s249_s30 }
   0x5   :  { %p256_p3 = por %p255_p2, %p254_p1 }
   0x7   :  { %p257_p4 = pnand %p256_p3, %p250_p0 }
   0x9   :  { %260 = shalt.err (!%p257_p4)  }
   0xa   :  { %s311_s8 = smov [#allocation3]   ;;  %s261_s9 = scalar_lea.vmem %s17_s29, 16 }
   0xb   :  { %15 = dma.vmem_to_smem %s13_s26, 16, %s311_s8, [#allocation2] }
   0xc   :  { %p262_p5 = scmp.ne.s32.totalorder %s17_s29, %s261_s9  ;;  %p266_p6 = scmp.lt.s32.totalorder %s17_s29, %s17_s29 }
   0xd   :  { %p267_p7 = scmp.lt.s32.totalorder %s261_s9, %s261_s9 }
   0xf   :  { %p268_p8 = por %p267_p7, %p266_p6 }
  0x11   :  { %p269_p9 = pnand %p268_p8, %p262_p5 }
  0x13   :  { %272 = shalt.err (!%p269_p9)  }
  0x14   :  { %s312_s0 = smov [#allocation4]   ;;  %s20_s11 = sshll.u32 %s431_s2, 4  ;;  %s21_s11 = int_to_ptr.vmem [resolvable:$true] %s20_s11 }
  0x15   :  { %19 = dma.vmem_to_smem %s17_s29, 16, %s312_s0, [#allocation2] }
  0x16   :  { %s273_s12 = scalar_lea.vmem %s21_s11, 16  ;;  %p278_p11 = scmp.lt.s32.totalorder %s21_s11, %s21_s11 }
  0x17   :  { %p274_p10 = scmp.ne.s32.totalorder %s21_s11, %s273_s12  ;;  %p279_p12 = scmp.lt.s32.totalorder %s273_s12, %s273_s12 }
  0x19   :  { %p280_p13 = por %p279_p12, %p278_p11 }
  0x1b   :  { %p281_p0 = pnand %p280_p13, %p274_p10 }
  0x1d   :  { %284 = shalt.err (!%p281_p0)  }
  0x1e   :  { %s313_s13 = smov [#allocation5]  }
  0x1f   :  { %23 = dma.vmem_to_smem %s21_s11, 16, %s313_s13, [#allocation2] }
  0x20   :  { %307 = dma.done.wait [#allocation2], 48 }
  0x21   :  { %308 = vsyncadd [#allocation2], 4294967248 }
  0x22   :  { %25 = sfence }
  0x23   :  { %s213_s14 = sld [smem:[#allocation3 + $0x1]]  ;;  %s39_s16 = sld [smem:[#allocation3]] }
  0x24   :  { %s368_s15 = sld [smem:[#allocation4 + $0x1]]  ;;  %s370_s17 = sld [smem:[#allocation4]] }
  0x25   :  { %26 = vsyncpa [#allocation7], 0  ;;  %vm48_vm0 = vcmask 253952   ;;  %v35_v8 = vld [vmem:[%s428_s6] sm:$0xff]  ;;  %v36_v9 = vld [vmem:[%s428_s6 + $0x8] sm:$0xff]  ;;  %v314_v11 = vmov 0.0|0.0  }
  0x26   :  { %v235_v10 = vpack.c.bf16 %v36_v9, %v35_v8  ;;  %234 = vmatprep.subr.bf16.mxu0 %v314_v11  ;;  %v37_v12 = vld [vmem:[%s428_s6 + $0x10] sm:$0xff]  ;;  %v38_v13 = vld [vmem:[%s428_s6 + $0x18] sm:$0xff]  ;;  %vm315_vm1 = vmmov 0   ;;  %v316_v15 = vmov 0.0   ;;  %vm87_vm2 = vcmask 1040384   ;;  %s216_s6 = sld [smem:[#allocation5 + $0x1]] }
  0x27   :  { %v238_v14 = vpack.c.bf16 %v38_v13, %v37_v12  ;;  %231 = vmatprep.mubr.msk.f32.mxu0 %vm315_vm1, %v316_v15  ;;  %vm89_vm3 = vcmask 1041408   ;;  %vm91_vm4 = vcmask 1042432   ;;  %vm93_vm5 = vcmask 261120  }
  0x28   :  { %236 = vmatpush3.bf16.msra.mxu0 %v235_v10  ;;  %v317_v36 = vmov 0  }
  0x29   :  { %s61_s19 = scalar_lea.vmem %s425_s3, %s213_s14  ;;  %s41_s25 = scalar_lea.vmem %s425_s3, %s39_s16  ;;  %237 = vmatprep.subr.bf16.mxu0 %v314_v11  ;;  %248 = vset.pattern.permute.xlu0 %v317_v36 }
  0x2a   :  { %s65_s22 = scalar_lea.vmem %s427_s5, %s368_s15  ;;  %v62_v0 = vld [vmem:[%s61_s19] sm:$0x1]  ;;  %s45_s28 = scalar_lea.vmem %s427_s5, %s370_s17 }
  0x2b   :  { %v66_v1 = vld [vmem:[%s65_s22] sm:$0x1]  ;;  %s63_s12 = scalar_lea.vmem %s426_s4, %s368_s15  ;;  %s43_s16 = scalar_lea.vmem %s426_s4, %s370_s17 }
  0x2c   :  { %v67_v2 = vmul.f32 %v66_v1, %v62_v0  ;;  %v42_v3 = vld [vmem:[%s41_s25] sm:$0x1]  ;;  %239 = vmatpush3.bf16.msra.mxu0 %v238_v14  ;;  %v85_v27 = vrot.slane %v66_v1, 5  ;;  %s181_s4 = sld [smem:[#allocation5]]  ;;  %s217_s15 = sld [smem:[#allocation5 + $0x2]]  ;;  %v186_v47 = vstv %s216_s6 }
  0x2d   :  { %v46_v4 = vld [vmem:[%s45_s28] sm:$0x1]  ;;  %s318_s17 = smov [#allocation6]  }
  0x2e   :  { %v47_v5 = vmul.f32 %v46_v4, %v42_v3  ;;  %v68_v6 = vsel %vm48_vm0, %v67_v2, 0.0  ;;  %v64_v18 = vld [vmem:[%s63_s12] sm:$0x1]  ;;  %v82_v26 = vrot.slane %v46_v4, 6  ;;  %s199_s2 = sshll.u32 %s318_s17, 4  ;;  %s200_s2 = int_to_ptr.vmem [resolvable:$true] %s199_s2 }
  0x2f   :  { %69 = vadd.xlane.f32.xlu0 %v68_v6  ;;  %v44_v23 = vld [vmem:[%s43_s16] sm:$0x1]  ;;  %s285_s18 = scalar_lea.vmem %s200_s2, 96  ;;  %p290_p2 = scmp.lt.s32.totalorder %s200_s2, %s200_s2 }
  0x30   :  { %v49_v7 = vsel %vm48_vm0, %v47_v5, 0.0  ;;  %p286_p1 = scmp.ne.s32.totalorder %s200_s2, %s285_s18  ;;  %p291_p3 = scmp.lt.s32.totalorder %s285_s18, %s285_s18 }
  0x32   :  { %v182_v46 = vstv %s181_s4  ;;  %v190_v48 = vstv %s217_s15  ;;  %p292_p4 = por %p291_p3, %p290_p2 }
  0x33   :  { %50 = vadd.xlane.f32.xlu0 %v49_v7 }
  0x34   :  { %p293_p5 = pnand %p292_p4, %p286_p1 }
  0xbc   :  { %v70_v16 = vpop.xlane.xlu0 %69 }
  0xbd   :  { %v71_v17 = vmul.f32 %v70_v16, %v66_v1 }
  0xbf   :  { %v72_v19 = vsub.f32 %v62_v0, %v71_v17 }
  0xc0   :  { %v51_v20 = vpop.xlane.xlu0 %50 }
  0xc1   :  { %v52_v21 = vmul.f32 %v51_v20, %v46_v4  ;;  %v73_v22 = vadd.f32 %v72_v19, %v64_v18 }
  0xc3   :  { %v53_v24 = vsub.f32 %v42_v3, %v52_v21  ;;  %v74_v25 = vmul.f32 %v73_v22, %v66_v1  ;;  %v79_v29 = vrot.slane %v73_v22, 7 }
  0xc5   :  { %v75_v28 = vsel %vm48_vm0, %v74_v25, 0.0  ;;  %v54_v30 = vadd.f32 %v53_v24, %v44_v23 }
  0xc6   :  { %76 = vadd.xlane.f32.xlu1 %v75_v28 }
  0xc7   :  { %v55_v31 = vmul.f32 %v54_v30, %v46_v4  ;;  %v88_v32 = vsel %vm87_vm2, %v54_v30, %v79_v29 }
  0xc8   :  { %v90_v33 = vsel %vm89_vm3, %v88_v32, %v82_v26 }
  0xc9   :  { %v56_v34 = vsel %vm48_vm0, %v55_v31, 0.0  ;;  %v92_v35 = vsel %vm91_vm4, %v90_v33, %v85_v27 }
  0xca   :  { %57 = vadd.xlane.f32.xlu1 %v56_v34  ;;  %232 = vmatmul.mubr.msk.f32.vlgmr.msra.gmra.mrb[0].mxu0 %vm93_vm5, %v92_v35 }
 0x153   :  { %v77_v37 = vpop.xlane.xlu1 %76 }
 0x154   :  { %v168_v38 = vrot.slane %v77_v37, 7 }
 0x157   :  { %v58_v39 = vpop.xlane.xlu1 %57 }
 0x158   :  { %v170_v40 = vsel %vm87_vm2, %v58_v39, %v168_v38 }
 0x159   :  { %173 = vperm.xlu0 %248, %v170_v40  }
 0x19d   :  { %v163_v41 = vpop.f32.mrb[0].mxu0 }
 0x19e   :  { %v233_v42 = vpop.f32.mrb[1].mxu0  ;;  %v177_v43 = vrot.slane %v163_v41, 2 }
 0x1d8   :  { %v174_v44 = vpop.permute.xlu0 %173 }
 0x1d9   :  { %v179_v45 = vmul.f32 %v177_v43, %v174_v44 }
 0x1db   :  { %v180_v49 = vsub.f32 %v163_v41, %v179_v45 }
 0x1dd   :  { %v183_v50 = vmul.f32 %v182_v46, %v180_v49  ;;  %v187_v51 = vmul.f32 %v186_v47, %v180_v49  ;;  %v191_v52 = vmul.f32 %v190_v48, %v180_v49 }
 0x1df   :  { %184 = vst [vmem:[#allocation6] sm:$0x3] %v183_v50  ;;  %188 = vst [vmem:[#allocation6 + $0x2] sm:$0x3] %v187_v51 }
 0x1e0   :  { %192 = vst [vmem:[#allocation6 + $0x4] sm:$0x3] %v191_v52 }
 0x1e1   :  { %296 = shalt.err (!%p293_p5)
}
 0x1e2   :  { %s297_s21 = scalar_lea.hbm %s429_s7, 96 }
 0x1e3   :  { %p298_p6 = scmp.ne.s32.totalorder %s429_s7, %s297_s21  ;;  %p301_p7 = scmp.lt.u32.totalorder %s297_s21, %s429_s7 }
 0x1e5   :  { %p303_p8 = pnand %p301_p7, %p298_p6 }
 0x1e7   :  { %306 = shalt.err (!%p303_p8)
}
 0x1e8   :  { %202 = dma.vmem_to_hbm [thread:$0]  %s200_s2, 96, %s429_s7, [#allocation7]  }
 0x1e9   :  { %309 = dma.done.wait [#allocation7], 96  }
 0x1ea   :  { %310 = vsyncadd [#allocation7], 4294967200 }
 0x1eb   :  { %206 = vsyncpa [#allocation7], 1 }

</bundles_post_ra>
